<compile_context>
chip_gen: v7x
topology: tpu7x:2x2x1
jax: 0.10.0
libtpu: 0.0.40
codegen_flags: <defaults>
</compile_context>

<pallas_src>
import functools

import jax
import jax.numpy as jnp
import numpy as np
from jax.experimental import pallas as pl
from jax.experimental.pallas import tpu as pltpu


# ---------------------------------------------------------------------------
# Host-side helpers (glue)
# ---------------------------------------------------------------------------
def bilinear_resize_matrix(n_out: int, n_in: int) -> np.ndarray:
    """Row-interpolation matrix M so that M @ v bilinearly resizes v (len n_in -> n_out)."""
    i = np.arange(n_out, dtype=np.float64)
    src = (i + 0.5) * (n_in / n_out) - 0.5
    src = np.clip(src, 0.0, n_in - 1)
    lo = np.floor(src).astype(np.int64)
    hi = np.minimum(lo + 1, n_in - 1)
    w = src - lo
    m = np.zeros((n_out, n_in), dtype=np.float64)
    np.add.at(m, (np.arange(n_out), lo), 1.0 - w)
    np.add.at(m, (np.arange(n_out), hi), w)
    return m.astype(np.float32)


def kron_resize_operator(h_in: int, w_in: int, h_out: int, w_out: int) -> np.ndarray:
    """R of shape (h_in*w_in, h_out*w_out): x_flat @ R == flatten(Rh @ X @ Rw^T)."""
    rh = bilinear_resize_matrix(h_out, h_in)
    rw = bilinear_resize_matrix(w_out, w_in)
    r = np.kron(rh, rw).T.astype(np.float32)
    # Guard for the bias-fold optimization: folding the additive bias onto the
    # narrow (input) side of the matmul is exact only if every column of R sums
    # to 1 (true for bilinear interpolation weights, including clipped edges).
    assert np.allclose(r.sum(axis=0), 1.0, atol=1e-5), "resize columns must sum to 1"
    return r


# ---------------------------------------------------------------------------
# Pallas kernel: one lane-dense matmul per row block, affine fused on the
# narrow (K=256) side.
# ---------------------------------------------------------------------------
def _vit_fe_kernel(x_ref, affine_ref, r_ref, o_ref):
    # x_ref:      (rb, K)       flattened input planes (one row per (n, c))
    # affine_ref: (rb, 2)       col 0 = per-row scale (rescale/std), col 1 = bias (-mean/std)
    # r_ref:      (K, M_out)    Kronecker resize operator (constant across steps)
    # o_ref:      (rb, M_out)   flattened, lane-dense output rows
    scale = affine_ref[:, 0:1]
    bias = affine_ref[:, 1:2]
    # Affine on the narrow side; exact because columns of R sum to 1.
    x = x_ref[...] * scale + bias
    o_ref[...] = jnp.dot(x, r_ref[...], preferred_element_type=jnp.float32)


@functools.partial(jax.jit, static_argnames=("row_block",))
def vit_feature_extractor(x, r_op, scale, bias, *, row_block=512):
    """x: (N, C, H_in, W_in) float32 pixel values in [0, 255].

    r_op: (H_in*W_in, image_h*image_w) Kronecker resize operator.
    scale/bias: per-channel affine (rescale + normalize folded).
    Returns (N, C * image_h * image_w) float32, matching
    ViT_FeatureExtractor.forward (preprocess + flatten).
    """
    n, c, h_in, w_in = x.shape
    k_in, m_out = r_op.shape
    rows = n * c

    # Flatten planes (free reshape). Per-row affine packed as a single (rows, 2)
    # input so there is one tiny DMA per step instead of two.
    x_flat = x.reshape(rows, h_in * w_in)
    scale_rows = jnp.broadcast_to(scale[None, :], (n, c)).reshape(rows)
    bias_rows = jnp.broadcast_to(bias[None, :], (n, c)).reshape(rows)
    affine = jnp.stack([scale_rows, bias_rows], axis=-1)  # (rows, 2)

    # Row-block the grid; one fat step when the problem is small. No input
    # padding: Pallas masks the ragged last block (OOB output rows are
    # discarded on writeback; rows are independent through the matmul).
    rb = rows if rows <= row_block else row_block
    num_blocks = pl.cdiv(rows, rb)
    # Prefer an even block count (>= 2) when the batch spans multiple blocks so
    # the "parallel" grid axis splits evenly across v7x's two TensorCores.
    if num_blocks > 1 and num_blocks % 2 == 1:
        target_blocks = num_blocks + 1
        rb = max(8, pl.cdiv(rows, target_blocks))
        rb = pl.cdiv(rb, 8) * 8          # keep the sublane dim a multiple of 8
        num_blocks = pl.cdiv(rows, rb)

    out = pl.pallas_call(
        _vit_fe_kernel,
        out_shape=jax.ShapeDtypeStruct((rows, m_out), jnp.float32),
        grid_spec=pltpu.PrefetchScalarGridSpec(
            num_scalar_prefetch=0,
            grid=(num_blocks,),
            in_specs=[
                pl.BlockSpec((rb, k_in), lambda i: (i, 0)),     # x rows
                pl.BlockSpec((rb, 2), lambda i: (i, 0)),        # packed scale/bias
                pl.BlockSpec((k_in, m_out), lambda i: (0, 0)),  # R (stays resident)
            ],
            out_specs=pl.BlockSpec((rb, m_out), lambda i: (i, 0)),
        ),
        compiler_params=pltpu.CompilerParams(
            dimension_semantics=("parallel",),
        ),
    )(x_flat, affine, r_op)

    # Flatten: features.view(features.size(0), -1). (rows, M) -> (N, C*M) is a
    # free contiguous reshape (row order is already (c, h, w) row-major).
    return out.reshape(n, -1)


# ---------------------------------------------------------------------------
# Pure-JAX reference (resize -> rescale+normalize -> flatten) for sanity check
# ---------------------------------------------------------------------------
def vit_feature_extractor_ref(x, rh, rw, scale, bias):
    resized = jnp.einsum("oh,nchw->ncow", rh, x)
    resized = jnp.einsum("pw,ncow->ncop", rw, resized)
    y = resized * scale[None, :, None, None] + bias[None, :, None, None]
    return y.reshape(x.shape[0], -1)


if __name__ == "__main__":
    # Small, deterministic config consistent with the module's __init__:
    #   image_C = 3, image_H = image_W = 32 (preprocessor target size),
    #   raw input images are 3 x 16 x 16.
    N, C = 2, 3
    H_IN, W_IN = 16, 16
    IMAGE_H, IMAGE_W = 32, 32

    key = jax.random.PRNGKey(0)
    x = jax.random.uniform(
        key, (N, C, H_IN, W_IN), dtype=jnp.float32, minval=0.0, maxval=255.0
    )

    # Deterministic "parameters" of the preprocessor.
    rh_np = bilinear_resize_matrix(IMAGE_H, H_IN)
    rw_np = bilinear_resize_matrix(IMAGE_W, W_IN)
    r_op = jnp.asarray(kron_resize_operator(H_IN, W_IN, IMAGE_H, IMAGE_W))

    image_mean = jnp.asarray([0.5, 0.5, 0.5], dtype=jnp.float32)   # ViT defaults
    image_std = jnp.asarray([0.5, 0.5, 0.5], dtype=jnp.float32)
    rescale = jnp.float32(1.0 / 255.0)
    scale = rescale / image_std                 # per-channel multiplicative factor
    bias = -image_mean / image_std              # per-channel additive factor

    feats = vit_feature_extractor(x, r_op, scale, bias)
    feats = jax.block_until_ready(feats)

    ref = vit_feature_extractor_ref(
        x, jnp.asarray(rh_np), jnp.asarray(rw_np), scale, bias
    )
    assert feats.shape == (N, C * IMAGE_H * IMAGE_W), feats.shape
    np.testing.assert_allclose(np.asarray(feats), np.asarray(ref), rtol=1e-5, atol=1e-5)

    print("KERNEL_OK")
</pallas_src>

<mosaic_0001>
module attributes {stable_mosaic.version = 11 : i64} {
  func.func @_vit_fe_kernel(%arg0: i32, %arg1: memref<6x256xf32, #tpu.memory_space<vmem>>, %arg2: memref<6x2xf32, #tpu.memory_space<vmem>>, %arg3: memref<256x1024xf32, #tpu.memory_space<vmem>>, %arg4: memref<6x1024xf32, #tpu.memory_space<vmem>>) attributes {dimension_semantics = [#tpu.dimension_semantics<parallel>], iteration_bounds = array<i64: 1>, scalar_prefetch = 0 : i64, scratch_operands = 0 : i64, tpu.core_type = #tpu.core_type<tc>, window_params = [{transform_indices = @transform_0, window_bounds = array<i64: 6, 256>}, {transform_indices = @transform_1, window_bounds = array<i64: 6, 2>}, {pipeline_mode = #tpu.pipeline_mode<synchronous>, transform_indices = @transform_2, window_bounds = array<i64: 256, 1024>}, {transform_indices = @transform_3, window_bounds = array<i64: 6, 1024>}]} {
    %c0 = arith.constant 0 : index
    %c0_0 = arith.constant 0 : index
    %0 = vector.load %arg2[%c0, %c0_0] : memref<6x2xf32, #tpu.memory_space<vmem>>, vector<6x1xf32>
    %c0_1 = arith.constant 0 : index
    %c1 = arith.constant 1 : index
    %1 = vector.load %arg2[%c0_1, %c1] : memref<6x2xf32, #tpu.memory_space<vmem>>, vector<6x1xf32>
    %c0_2 = arith.constant 0 : index
    %c0_3 = arith.constant 0 : index
    %2 = vector.load %arg1[%c0_2, %c0_3] : memref<6x256xf32, #tpu.memory_space<vmem>>, vector<6x256xf32>
    %3 = vector.broadcast %0 : vector<6x1xf32> to vector<6x256xf32>
    %4 = arith.mulf %2, %3 : vector<6x256xf32>
    %5 = vector.broadcast %1 : vector<6x1xf32> to vector<6x256xf32>
    %6 = arith.addf %4, %5 : vector<6x256xf32>
    %c0_4 = arith.constant 0 : index
    %c0_5 = arith.constant 0 : index
    %7 = vector.load %arg3[%c0_4, %c0_5] : memref<256x1024xf32, #tpu.memory_space<vmem>>, vector<256x1024xf32>
    %cst = arith.constant dense<0.000000e+00> : vector<6x1024xf32>
    %8 = tpu.matmul %6, %7, %cst {dimension_numbers = #tpu.dot_dimension_numbers<[1], [0], [0], [1], [0, 0, 1, 1], [], []>} : vector<6x256xf32>, vector<256x1024xf32>, vector<6x1024xf32> -> vector<6x1024xf32>
    %c0_6 = arith.constant 0 : index
    %c0_7 = arith.constant 0 : index
    %9 = vector.load %arg4[%c0_6, %c0_7] : memref<6x1024xf32, #tpu.memory_space<vmem>>, vector<6x1024xf32>
    tpu.vector_store %arg4[%c0_6, %c0_7], %8 {strides = array<i32>} : memref<6x1024xf32, #tpu.memory_space<vmem>>, vector<6x1024xf32>,
    return
  }
  func.func @transform_0(%arg0: i32) -> (i32, i32) {
    %c0_i32 = arith.constant 0 : i32
    %c0_i32_0 = arith.constant 0 : i32
    return %arg0, %c0_i32 : i32, i32
  }
  func.func @transform_1(%arg0: i32) -> (i32, i32) {
    %c0_i32 = arith.constant 0 : i32
    %c0_i32_0 = arith.constant 0 : i32
    return %arg0, %c0_i32 : i32, i32
  }
  func.func @transform_2(%arg0: i32) -> (i32, i32) {
    %c0_i32 = arith.constant 0 : i32
    %c0_i32_0 = arith.constant 0 : i32
    %c0_i32_1 = arith.constant 0 : i32
    return %c0_i32, %c0_i32_0 : i32, i32
  }
  func.func @transform_3(%arg0: i32) -> (i32, i32) {
    %c0_i32 = arith.constant 0 : i32
    %c0_i32_0 = arith.constant 0 : i32
    return %arg0, %c0_i32 : i32, i32
  }
}

</mosaic_0001>

<bundles_post_ra>
// kernel: vit_feature_extractor.1
= control target key start
LH: loop header
LB: loop body
LE: loop exit
PB: predicated region body
PF: predicated region fallthrough
CT: control target
= control target key end

     0   :  { %8 = vsyncpa [#allocation3], 0  ;;  %s884_s12 = smov [#allocation2]   ;;  %s960_s0 = inlined_call_operand.vmem [shape: f32[6,256], index: 0, kind: input, shape index: {}]   ;;  %s961_s1 = inlined_call_operand.vmem [shape: f32[6,2], index: 1, kind: input, shape index: {}]   ;;  %s962_s2 = inlined_call_operand.hbm [shape: f32[256,1024], index: 2, kind: input, shape index: {}]   ;;  %s963_s3 = inlined_call_operand.vmem [shape: f32[6,1024], index: 3, kind: output, shape index: {}]  }
   0x1   :  { %s18_s13 = sshll.u32 %s884_s12, 4  ;;  %s860_s16 = scalar_lea.hbm %s962_s2, 32768  ;;  %s19_s13 = int_to_ptr.vmem [resolvable:$true] %s18_s13 }
   0x2   :  { %p861_p0 = scmp.ne.s32.totalorder %s962_s2, %s860_s16  ;;  %p864_p1 = scmp.lt.u32.totalorder %s860_s16, %s962_s2 }
   0x4   :  { %p866_p2 = pnand %p864_p1, %p861_p0 }
   0x6   :  { %869 = shalt.err (!%p866_p2)
}
   0x7   :  { %s870_s21 = scalar_lea.vmem %s19_s13, 32768  ;;  %p875_p4 = scmp.lt.s32.totalorder %s19_s13, %s19_s13 }
   0x8   :  { %p871_p3 = scmp.ne.s32.totalorder %s19_s13, %s870_s21  ;;  %p876_p5 = scmp.lt.s32.totalorder %s870_s21, %s870_s21 }
   0xa   :  { %p877_p6 = por %p876_p5, %p875_p4 }
   0xc   :  { %p878_p7 = pnand %p877_p6, %p871_p3 }
   0xe   :  { %881 = shalt.err (!%p878_p7)
}
   0xf   :  { %s885_s22 = smov 1024   ;;  %s886_s23 = smov 64  }
  0x10   :  { %24 = dma.hbm_to_vmem [thread:$0]  %s962_s2, 32768, %s19_s13, [#allocation3], %s885_s22, %s885_s22, %s886_s23  }
  0x11   :  { %882 = dma.done.wait [#allocation3], 32768  }
  0x12   :  { %883 = vsyncadd [#allocation3], 4294934528  ;;  %v887_v0 = vmov 0   ;;  %v28_v1 = vld [vmem:[%s961_s1] sm:$0x3f]  ;;  %v45_v2 = vld [vmem:[#allocation2 + $0x8] sm:$0xff] }
  0x13   :  { %858 = vset.pattern.permute.xlu0 %v887_v0  ;;  %v53_v3 = vld [vmem:[#allocation2 + $0x48] sm:$0xff]  ;;  %v47_v5 = vld [vmem:[#allocation2 + $0x18] sm:$0xff]  ;;  %v44_v7 = vld [vmem:[#allocation2] sm:$0xff]  ;;  %v888_v21 = vmov 1  }
  0x14   :  { %33 = vperm.xlu0 %858, %v28_v1   ;;  %v597_v4 = vpack.c.bf16 %v53_v3, %v45_v2  ;;  %v55_v6 = vld [vmem:[#allocation2 + $0x58] sm:$0xff]  ;;  %v52_v9 = vld [vmem:[#allocation2 + $0x40] sm:$0xff]  ;;  %v46_v10 = vld [vmem:[#allocation2 + $0x10] sm:$0xff] }
  0x15   :  { %v661_v8 = vpack.c.bf16 %v55_v6, %v47_v5  ;;  %v54_v11 = vld [vmem:[#allocation2 + $0x50] sm:$0xff]  ;;  %v599_v12 = vpack.c.bf16 %v52_v9, %v44_v7  ;;  %v61_v14 = vld [vmem:[#allocation2 + $0x88] sm:$0xff]  ;;  %v63_v16 = vld [vmem:[#allocation2 + $0x98] sm:$0xff] }
  0x16   :  { %598 = vmatprep.subr.bf16.mxu0 %v597_v4  ;;  %v663_v13 = vpack.c.bf16 %v54_v11, %v46_v10  ;;  %v69_v15 = vld [vmem:[#allocation2 + $0xc8] sm:$0xff]  ;;  %v71_v18 = vld [vmem:[#allocation2 + $0xd8] sm:$0xff]  ;;  %v60_v19 = vld [vmem:[#allocation2 + $0x80] sm:$0xff] }
  0x17   :  { %662 = vmatprep.subr.bf16.mxu1 %v661_v8  ;;  %v601_v17 = vpack.c.bf16 %v69_v15, %v61_v14  ;;  %v68_v20 = vld [vmem:[#allocation2 + $0xc0] sm:$0xff]  ;;  %600 = vmatpush1.bf16.msra.mxu0 %v599_v12  ;;  %v665_v22 = vpack.c.bf16 %v71_v18, %v63_v16  ;;  %v62_v24 = vld [vmem:[#allocation2 + $0x90] sm:$0xff]  ;;  %v77_v26 = vld [vmem:[#allocation2 + $0x108] sm:$0xff] }
  0x18   :  { %859 = vset.pattern.permute.xlu0 %v888_v21  ;;  %v603_v23 = vpack.c.bf16 %v68_v20, %v60_v19  ;;  %v70_v25 = vld [vmem:[#allocation2 + $0xd0] sm:$0xff]  ;;  %664 = vmatpush1.bf16.msra.mxu1 %v663_v13  ;;  %v85_v28 = vld [vmem:[#allocation2 + $0x148] sm:$0xff]  ;;  %v79_v29 = vld [vmem:[#allocation2 + $0x118] sm:$0xff] }
  0x19   :  { %39 = vperm.xlu0 %859, %v28_v1   ;;  %v667_v27 = vpack.c.bf16 %v70_v25, %v62_v24  ;;  %v87_v30 = vld [vmem:[#allocation2 + $0x158] sm:$0xff]  ;;  %602 = vmatprep.subr.bf16.mxu0 %v601_v17  ;;  %v605_v31 = vpack.c.bf16 %v85_v28, %v77_v26  ;;  %v76_v33 = vld [vmem:[#allocation2 + $0x100] sm:$0xff]  ;;  %v78_v35 = vld [vmem:[#allocation2 + $0x110] sm:$0xff] }
  0x1a   :  { %666 = vmatprep.subr.bf16.mxu1 %v665_v22  ;;  %v669_v32 = vpack.c.bf16 %v87_v30, %v79_v29  ;;  %v84_v34 = vld [vmem:[#allocation2 + $0x140] sm:$0xff]  ;;  %v86_v36 = vld [vmem:[#allocation2 + $0x150] sm:$0xff]  ;;  %v93_v37 = vld [vmem:[#allocation2 + $0x188] sm:$0xff] }
  0x1b   :  { %v101_v38 = vld [vmem:[#allocation2 + $0x1c8] sm:$0xff]  ;;  %604 = vmatpush1.bf16.msra.mxu0 %v603_v23  ;;  %v607_v39 = vpack.c.bf16 %v84_v34, %v76_v33  ;;  %v95_v40 = vld [vmem:[#allocation2 + $0x198] sm:$0xff]  ;;  %v671_v42 = vpack.c.bf16 %v86_v36, %v78_v35  ;;  %v92_v44 = vld [vmem:[#allocation2 + $0x180] sm:$0xff] }
  0x1c   :  { %v103_v41 = vld [vmem:[#allocation2 + $0x1d8] sm:$0xff]  ;;  %668 = vmatpush1.bf16.msra.mxu1 %v667_v27  ;;  %606 = vmatprep.subr.bf16.mxu0 %v605_v31  ;;  %v609_v43 = vpack.c.bf16 %v101_v38, %v93_v37  ;;  %v100_v45 = vld [vmem:[#allocation2 + $0x1c0] sm:$0xff]  ;;  %v94_v46 = vld [vmem:[#allocation2 + $0x190] sm:$0xff] }
  0x1d   :  { %670 = vmatprep.subr.bf16.mxu1 %v669_v32  ;;  %v673_v47 = vpack.c.bf16 %v103_v41, %v95_v40  ;;  %v102_v48 = vld [vmem:[#allocation2 + $0x1d0] sm:$0xff]  ;;  %v109_v49 = vld [vmem:[#allocation2 + $0x208] sm:$0xff]  ;;  %v111_v51 = vld [vmem:[#allocation2 + $0x218] sm:$0xff]  ;;  %v611_v53 = vpack.c.bf16 %v100_v45, %v92_v44 }
  0x1e   :  { %v117_v50 = vld [vmem:[#allocation2 + $0x248] sm:$0xff]  ;;  %v119_v52 = vld [vmem:[#allocation2 + $0x258] sm:$0xff]  ;;  %v675_v54 = vpack.c.bf16 %v102_v48, %v94_v46  ;;  %v108_v56 = vld [vmem:[#allocation2 + $0x200] sm:$0xff] }
  0x1f   :  { %608 = vmatpush1.bf16.msra.mxu0 %v607_v39  ;;  %v613_v55 = vpack.c.bf16 %v117_v50, %v109_v49  ;;  %v116_v57 = vld [vmem:[#allocation2 + $0x240] sm:$0xff]  ;;  %v110_v58 = vld [vmem:[#allocation2 + $0x210] sm:$0xff]  ;;  %v677_v59 = vpack.c.bf16 %v119_v52, %v111_v51  ;;  %v125_v61 = vld [vmem:[#allocation2 + $0x288] sm:$0xff] }
  0x20   :  { %672 = vmatpush1.bf16.msra.mxu1 %v671_v42  ;;  %610 = vmatprep.subr.bf16.mxu0 %v609_v43  ;;  %v118_v60 = vld [vmem:[#allocation2 + $0x250] sm:$0xff]  ;;  %v133_v62 = vld [vmem:[#allocation2 + $0x2c8] sm:$0xff]  ;;  %v127_v63 = vld [vmem:[#allocation2 + $0x298] sm:$0xff]  ;;  %v615_v1 = vpack.c.bf16 %v116_v57, %v108_v56 }
  0x21   :  { %674 = vmatprep.subr.bf16.mxu1 %v673_v47  ;;  %v135_v0 = vld [vmem:[#allocation2 + $0x2d8] sm:$0xff]  ;;  %v679_v2 = vpack.c.bf16 %v118_v60, %v110_v58  ;;  %v617_v3 = vpack.c.bf16 %v133_v62, %v125_v61  ;;  %v124_v4 = vld [vmem:[#allocation2 + $0x280] sm:$0xff]  ;;  %v126_v6 = vld [vmem:[#allocation2 + $0x290] sm:$0xff] }
  0x22   :  { %v132_v5 = vld [vmem:[#allocation2 + $0x2c0] sm:$0xff]  ;;  %v681_v7 = vpack.c.bf16 %v135_v0, %v127_v63  ;;  %v134_v8 = vld [vmem:[#allocation2 + $0x2d0] sm:$0xff]  ;;  %v141_v9 = vld [vmem:[#allocation2 + $0x308] sm:$0xff] }
  0x23   :  { %612 = vmatpush1.bf16.msra.mxu0 %v611_v53  ;;  %v149_v10 = vld [vmem:[#allocation2 + $0x348] sm:$0xff]  ;;  %v143_v11 = vld [vmem:[#allocation2 + $0x318] sm:$0xff]  ;;  %v619_v13 = vpack.c.bf16 %v132_v5, %v124_v4  ;;  %v683_v14 = vpack.c.bf16 %v134_v8, %v126_v6  ;;  %v140_v16 = vld [vmem:[#allocation2 + $0x300] sm:$0xff] }
  0x24   :  { %676 = vmatpush1.bf16.msra.mxu1 %v675_v54  ;;  %614 = vmatprep.subr.bf16.mxu0 %v613_v55  ;;  %v151_v12 = vld [vmem:[#allocation2 + $0x358] sm:$0xff]  ;;  %v621_v15 = vpack.c.bf16 %v149_v10, %v141_v9  ;;  %v148_v17 = vld [vmem:[#allocation2 + $0x340] sm:$0xff]  ;;  %v142_v18 = vld [vmem:[#allocation2 + $0x310] sm:$0xff] }
  0x25   :  { %678 = vmatprep.subr.bf16.mxu1 %v677_v59  ;;  %v685_v19 = vpack.c.bf16 %v151_v12, %v143_v11  ;;  %v150_v20 = vld [vmem:[#allocation2 + $0x350] sm:$0xff]  ;;  %v157_v21 = vld [vmem:[#allocation2 + $0x388] sm:$0xff]  ;;  %v159_v23 = vld [vmem:[#allocation2 + $0x398] sm:$0xff]  ;;  %v623_v25 = vpack.c.bf16 %v148_v17, %v140_v16 }
  0x26   :  { %v165_v22 = vld [vmem:[#allocation2 + $0x3c8] sm:$0xff]  ;;  %v167_v24 = vld [vmem:[#allocation2 + $0x3d8] sm:$0xff]  ;;  %v687_v26 = vpack.c.bf16 %v150_v20, %v142_v18  ;;  %v156_v28 = vld [vmem:[#allocation2 + $0x380] sm:$0xff] }
  0x27   :  { %616 = vmatpush1.bf16.msra.mxu0 %v615_v1  ;;  %v625_v27 = vpack.c.bf16 %v165_v22, %v157_v21  ;;  %v164_v29 = vld [vmem:[#allocation2 + $0x3c0] sm:$0xff]  ;;  %v158_v30 = vld [vmem:[#allocation2 + $0x390] sm:$0xff]  ;;  %v689_v31 = vpack.c.bf16 %v167_v24, %v159_v23  ;;  %v173_v33 = vld [vmem:[#allocation2 + $0x408] sm:$0xff] }
  0x28   :  { %680 = vmatpush1.bf16.msra.mxu1 %v679_v2  ;;  %618 = vmatprep.subr.bf16.mxu0 %v617_v3  ;;  %v166_v32 = vld [vmem:[#allocation2 + $0x3d0] sm:$0xff]  ;;  %v181_v34 = vld [vmem:[#allocation2 + $0x448] sm:$0xff]  ;;  %v175_v35 = vld [vmem:[#allocation2 + $0x418] sm:$0xff]  ;;  %v627_v37 = vpack.c.bf16 %v164_v29, %v156_v28 }
  0x29   :  { %682 = vmatprep.subr.bf16.mxu1 %v681_v7  ;;  %v183_v36 = vld [vmem:[#allocation2 + $0x458] sm:$0xff]  ;;  %v691_v38 = vpack.c.bf16 %v166_v32, %v158_v30  ;;  %v629_v39 = vpack.c.bf16 %v181_v34, %v173_v33  ;;  %v172_v40 = vld [vmem:[#allocation2 + $0x400] sm:$0xff]  ;;  %v174_v42 = vld [vmem:[#allocation2 + $0x410] sm:$0xff] }
  0x2a   :  { %v180_v41 = vld [vmem:[#allocation2 + $0x440] sm:$0xff]  ;;  %v693_v43 = vpack.c.bf16 %v183_v36, %v175_v35  ;;  %v182_v44 = vld [vmem:[#allocation2 + $0x450] sm:$0xff]  ;;  %v189_v45 = vld [vmem:[#allocation2 + $0x488] sm:$0xff] }
  0x2b   :  { %620 = vmatpush1.bf16.msra.mxu0 %v619_v13  ;;  %v197_v46 = vld [vmem:[#allocation2 + $0x4c8] sm:$0xff]  ;;  %v191_v47 = vld [vmem:[#allocation2 + $0x498] sm:$0xff]  ;;  %v631_v49 = vpack.c.bf16 %v180_v41, %v172_v40  ;;  %v695_v50 = vpack.c.bf16 %v182_v44, %v174_v42  ;;  %v188_v52 = vld [vmem:[#allocation2 + $0x480] sm:$0xff] }
  0x2c   :  { %684 = vmatpush1.bf16.msra.mxu1 %v683_v14  ;;  %622 = vmatprep.subr.bf16.mxu0 %v621_v15  ;;  %v199_v48 = vld [vmem:[#allocation2 + $0x4d8] sm:$0xff]  ;;  %v633_v51 = vpack.c.bf16 %v197_v46, %v189_v45  ;;  %v196_v53 = vld [vmem:[#allocation2 + $0x4c0] sm:$0xff]  ;;  %v190_v54 = vld [vmem:[#allocation2 + $0x490] sm:$0xff] }
  0x2d   :  { %686 = vmatprep.subr.bf16.mxu1 %v685_v19  ;;  %v697_v55 = vpack.c.bf16 %v199_v48, %v191_v47  ;;  %v198_v56 = vld [vmem:[#allocation2 + $0x4d0] sm:$0xff]  ;;  %v205_v57 = vld [vmem:[#allocation2 + $0x508] sm:$0xff]  ;;  %v207_v59 = vld [vmem:[#allocation2 + $0x518] sm:$0xff]  ;;  %v635_v61 = vpack.c.bf16 %v196_v53, %v188_v52 }
  0x2e   :  { %v213_v58 = vld [vmem:[#allocation2 + $0x548] sm:$0xff]  ;;  %v215_v60 = vld [vmem:[#allocation2 + $0x558] sm:$0xff]  ;;  %v699_v62 = vpack.c.bf16 %v198_v56, %v190_v54  ;;  %v204_v0 = vld [vmem:[#allocation2 + $0x500] sm:$0xff] }
  0x2f   :  { %624 = vmatpush1.bf16.msra.mxu0 %v623_v25  ;;  %v637_v63 = vpack.c.bf16 %v213_v58, %v205_v57  ;;  %v212_v1 = vld [vmem:[#allocation2 + $0x540] sm:$0xff]  ;;  %v206_v2 = vld [vmem:[#allocation2 + $0x510] sm:$0xff]  ;;  %v701_v3 = vpack.c.bf16 %v215_v60, %v207_v59  ;;  %v221_v5 = vld [vmem:[#allocation2 + $0x588] sm:$0xff] }
  0x30   :  { %688 = vmatpush1.bf16.msra.mxu1 %v687_v26  ;;  %626 = vmatprep.subr.bf16.mxu0 %v625_v27  ;;  %v214_v4 = vld [vmem:[#allocation2 + $0x550] sm:$0xff]  ;;  %v229_v6 = vld [vmem:[#allocation2 + $0x5c8] sm:$0xff]  ;;  %v223_v7 = vld [vmem:[#allocation2 + $0x598] sm:$0xff]  ;;  %v639_v9 = vpack.c.bf16 %v212_v1, %v204_v0 }
  0x31   :  { %690 = vmatprep.subr.bf16.mxu1 %v689_v31  ;;  %v231_v8 = vld [vmem:[#allocation2 + $0x5d8] sm:$0xff]  ;;  %v703_v10 = vpack.c.bf16 %v214_v4, %v206_v2  ;;  %v641_v11 = vpack.c.bf16 %v229_v6, %v221_v5  ;;  %v220_v12 = vld [vmem:[#allocation2 + $0x580] sm:$0xff]  ;;  %v222_v14 = vld [vmem:[#allocation2 + $0x590] sm:$0xff] }
  0x32   :  { %v228_v13 = vld [vmem:[#allocation2 + $0x5c0] sm:$0xff]  ;;  %v705_v15 = vpack.c.bf16 %v231_v8, %v223_v7  ;;  %v230_v16 = vld [vmem:[#allocation2 + $0x5d0] sm:$0xff]  ;;  %v237_v17 = vld [vmem:[#allocation2 + $0x608] sm:$0xff] }
  0x33   :  { %628 = vmatpush1.bf16.msra.mxu0 %v627_v37  ;;  %v245_v18 = vld [vmem:[#allocation2 + $0x648] sm:$0xff]  ;;  %v239_v19 = vld [vmem:[#allocation2 + $0x618] sm:$0xff]  ;;  %v643_v21 = vpack.c.bf16 %v228_v13, %v220_v12  ;;  %v707_v22 = vpack.c.bf16 %v230_v16, %v222_v14  ;;  %v236_v24 = vld [vmem:[#allocation2 + $0x600] sm:$0xff] }
  0x34   :  { %692 = vmatpush1.bf16.msra.mxu1 %v691_v38  ;;  %630 = vmatprep.subr.bf16.mxu0 %v629_v39  ;;  %v247_v20 = vld [vmem:[#allocation2 + $0x658] sm:$0xff]  ;;  %v645_v23 = vpack.c.bf16 %v245_v18, %v237_v17  ;;  %v244_v25 = vld [vmem:[#allocation2 + $0x640] sm:$0xff]  ;;  %v238_v26 = vld [vmem:[#allocation2 + $0x610] sm:$0xff] }
  0x35   :  { %694 = vmatprep.subr.bf16.mxu1 %v693_v43  ;;  %v709_v27 = vpack.c.bf16 %v247_v20, %v239_v19  ;;  %v246_v28 = vld [vmem:[#allocation2 + $0x650] sm:$0xff]  ;;  %v253_v29 = vld [vmem:[#allocation2 + $0x688] sm:$0xff]  ;;  %v255_v31 = vld [vmem:[#allocation2 + $0x698] sm:$0xff]  ;;  %v647_v33 = vpack.c.bf16 %v244_v25, %v236_v24 }
  0x36   :  { %v261_v30 = vld [vmem:[#allocation2 + $0x6c8] sm:$0xff]  ;;  %v263_v32 = vld [vmem:[#allocation2 + $0x6d8] sm:$0xff]  ;;  %v711_v34 = vpack.c.bf16 %v246_v28, %v238_v26  ;;  %v252_v36 = vld [vmem:[#allocation2 + $0x680] sm:$0xff] }
  0x37   :  { %632 = vmatpush1.bf16.msra.mxu0 %v631_v49  ;;  %v649_v35 = vpack.c.bf16 %v261_v30, %v253_v29  ;;  %v260_v37 = vld [vmem:[#allocation2 + $0x6c0] sm:$0xff]  ;;  %v254_v38 = vld [vmem:[#allocation2 + $0x690] sm:$0xff]  ;;  %v713_v39 = vpack.c.bf16 %v263_v32, %v255_v31  ;;  %v269_v41 = vld [vmem:[#allocation2 + $0x708] sm:$0xff] }
  0x38   :  { %696 = vmatpush1.bf16.msra.mxu1 %v695_v50  ;;  %634 = vmatprep.subr.bf16.mxu0 %v633_v51  ;;  %v262_v40 = vld [vmem:[#allocation2 + $0x6d0] sm:$0xff]  ;;  %v277_v42 = vld [vmem:[#allocation2 + $0x748] sm:$0xff]  ;;  %v271_v43 = vld [vmem:[#allocation2 + $0x718] sm:$0xff]  ;;  %v651_v45 = vpack.c.bf16 %v260_v37, %v252_v36 }
  0x39   :  { %698 = vmatprep.subr.bf16.mxu1 %v697_v55  ;;  %v279_v44 = vld [vmem:[#allocation2 + $0x758] sm:$0xff]  ;;  %v715_v46 = vpack.c.bf16 %v262_v40, %v254_v38  ;;  %v653_v47 = vpack.c.bf16 %v277_v42, %v269_v41  ;;  %v268_v48 = vld [vmem:[#allocation2 + $0x700] sm:$0xff]  ;;  %v270_v50 = vld [vmem:[#allocation2 + $0x710] sm:$0xff] }
  0x3a   :  { %v276_v49 = vld [vmem:[#allocation2 + $0x740] sm:$0xff]  ;;  %v717_v51 = vpack.c.bf16 %v279_v44, %v271_v43  ;;  %v278_v52 = vld [vmem:[#allocation2 + $0x750] sm:$0xff]  ;;  %v285_v53 = vld [vmem:[#allocation2 + $0x788] sm:$0xff] }
  0x3b   :  { %636 = vmatpush1.bf16.msra.mxu0 %v635_v61  ;;  %v293_v54 = vld [vmem:[#allocation2 + $0x7c8] sm:$0xff]  ;;  %v287_v55 = vld [vmem:[#allocation2 + $0x798] sm:$0xff]  ;;  %v655_v57 = vpack.c.bf16 %v276_v49, %v268_v48  ;;  %v719_v58 = vpack.c.bf16 %v278_v52, %v270_v50  ;;  %v284_v60 = vld [vmem:[#allocation2 + $0x780] sm:$0xff] }
  0x3c   :  { %700 = vmatpush1.bf16.msra.mxu1 %v699_v62  ;;  %638 = vmatprep.subr.bf16.mxu0 %v637_v63  ;;  %v295_v56 = vld [vmem:[#allocation2 + $0x7d8] sm:$0xff]  ;;  %v657_v59 = vpack.c.bf16 %v293_v54, %v285_v53  ;;  %v292_v61 = vld [vmem:[#allocation2 + $0x7c0] sm:$0xff]  ;;  %v286_v62 = vld [vmem:[#allocation2 + $0x790] sm:$0xff] }
  0x3d   :  { %702 = vmatprep.subr.bf16.mxu1 %v701_v3  ;;  %v721_v63 = vpack.c.bf16 %v295_v56, %v287_v55  ;;  %v294_v0 = vld [vmem:[#allocation2 + $0x7d0] sm:$0xff]  ;;  %v49_v1 = vld [vmem:[#allocation2 + $0x28] sm:$0xff]  ;;  %v51_v3 = vld [vmem:[#allocation2 + $0x38] sm:$0xff]  ;;  %v659_v5 = vpack.c.bf16 %v292_v61, %v284_v60 }
  0x3e   :  { %v57_v2 = vld [vmem:[#allocation2 + $0x68] sm:$0xff]  ;;  %v59_v4 = vld [vmem:[#allocation2 + $0x78] sm:$0xff]  ;;  %v723_v6 = vpack.c.bf16 %v294_v0, %v286_v62  ;;  %v48_v12 = vld [vmem:[#allocation2 + $0x20] sm:$0xff] }
  0x3f   :  { %640 = vmatpush1.bf16.msra.mxu0 %v639_v9  ;;  %v725_v7 = vpack.c.bf16 %v57_v2, %v49_v1  ;;  %v789_v8 = vpack.c.bf16 %v59_v4, %v51_v3  ;;  %v56_v13 = vld [vmem:[#allocation2 + $0x60] sm:$0xff]  ;;  %v50_v14 = vld [vmem:[#allocation2 + $0x30] sm:$0xff]  ;;  %v65_v18 = vld [vmem:[#allocation2 + $0xa8] sm:$0xff] }
  0x40   :  { %704 = vmatpush1.bf16.msra.mxu1 %v703_v10  ;;  %642 = vmatprep.subr.bf16.mxu0 %v641_v11  ;;  %v29_v10 = vld [vmem:[%s960_s0] sm:$0x3f]  ;;  %v30_v11 = vld [vmem:[%s960_s0 + $0x8] sm:$0x3f]  ;;  %v727_v25 = vpack.c.bf16 %v56_v13, %v48_v12  ;;  %v66_v29 = vld [vmem:[#allocation2 + $0xb0] sm:$0xff] }
  0x41   :  { %706 = vmatprep.subr.bf16.mxu1 %v705_v15  ;;  %v58_v15 = vld [vmem:[#allocation2 + $0x70] sm:$0xff]  ;;  %v73_v20 = vld [vmem:[#allocation2 + $0xe8] sm:$0xff]  ;;  %v72_v28 = vld [vmem:[#allocation2 + $0xe0] sm:$0xff] }
  0x42   :  { %v791_v26 = vpack.c.bf16 %v58_v15, %v50_v14  ;;  %v74_v30 = vld [vmem:[#allocation2 + $0xf0] sm:$0xff]  ;;  %v81_v31 = vld [vmem:[#allocation2 + $0x128] sm:$0xff]  ;;  %v729_v32 = vpack.c.bf16 %v73_v20, %v65_v18  ;;  %v91_v36 = vld [vmem:[#allocation2 + $0x178] sm:$0xff] }
  0x43   :  { %644 = vmatpush1.bf16.msra.mxu0 %v643_v21  ;;  %v67_v21 = vld [vmem:[#allocation2 + $0xb8] sm:$0xff]  ;;  %v795_v38 = vpack.c.bf16 %v74_v30, %v66_v29  ;;  %v88_v40 = vld [vmem:[#allocation2 + $0x160] sm:$0xff]  ;;  %v82_v43 = vld [vmem:[#allocation2 + $0x130] sm:$0xff] }
  0x44   :  { %708 = vmatpush1.bf16.msra.mxu1 %v707_v22  ;;  %646 = vmatprep.subr.bf16.mxu0 %v645_v23  ;;  %v75_v22 = vld [vmem:[#allocation2 + $0xf8] sm:$0xff]  ;;  %v90_v44 = vld [vmem:[#allocation2 + $0x170] sm:$0xff]  ;;  %v104_v52 = vld [vmem:[#allocation2 + $0x1e0] sm:$0xff] }
  0x45   :  { %710 = vmatprep.subr.bf16.mxu1 %v709_v27  ;;  %v64_v27 = vld [vmem:[#allocation2 + $0xa0] sm:$0xff]  ;;  %v107_v48 = vld [vmem:[#allocation2 + $0x1f8] sm:$0xff]  ;;  %v799_v50 = vpack.c.bf16 %v90_v44, %v82_v43  ;;  %v98_v55 = vld [vmem:[#allocation2 + $0x1b0] sm:$0xff] }
  0x46   :  { %v731_v37 = vpack.c.bf16 %v72_v28, %v64_v27  ;;  %v106_v56 = vld [vmem:[#allocation2 + $0x1f0] sm:$0xff]  ;;  %v123_v60 = vld [vmem:[#allocation2 + $0x278] sm:$0xff]  ;;  %v120_v0 = vld [vmem:[#allocation2 + $0x260] sm:$0xff] }
  0x47   :  { %648 = vmatpush1.bf16.msra.mxu0 %v647_v33  ;;  %v793_v33 = vpack.c.bf16 %v75_v22, %v67_v21  ;;  %v803_v62 = vpack.c.bf16 %v106_v56, %v98_v55  ;;  %v114_v3 = vld [vmem:[#allocation2 + $0x230] sm:$0xff]  ;;  %v136_v12 = vld [vmem:[#allocation2 + $0x2e0] sm:$0xff]  ;;  %v153_v18 = vld [vmem:[#allocation2 + $0x368] sm:$0xff] }
  0x48   :  { %712 = vmatpush1.bf16.msra.mxu1 %v711_v34  ;;  %650 = vmatprep.subr.bf16.mxu0 %v649_v35  ;;  %v89_v34 = vld [vmem:[#allocation2 + $0x168] sm:$0xff]  ;;  %v83_v35 = vld [vmem:[#allocation2 + $0x138] sm:$0xff]  ;;  %v122_v4 = vld [vmem:[#allocation2 + $0x270] sm:$0xff] }
  0x49   :  { %714 = vmatprep.subr.bf16.mxu1 %v713_v39  ;;  %v80_v39 = vld [vmem:[#allocation2 + $0x120] sm:$0xff]  ;;  %v733_v41 = vpack.c.bf16 %v89_v34, %v81_v31  ;;  %v797_v42 = vpack.c.bf16 %v91_v36, %v83_v35  ;;  %v130_v15 = vld [vmem:[#allocation2 + $0x2b0] sm:$0xff]  ;;  %v155_v20 = vld [vmem:[#allocation2 + $0x378] sm:$0xff] }
  0x4a   :  { %v735_v49 = vpack.c.bf16 %v88_v40, %v80_v39  ;;  %v146_v28 = vld [vmem:[#allocation2 + $0x330] sm:$0xff]  ;;  %v161_v30 = vld [vmem:[#allocation2 + $0x3a8] sm:$0xff]  ;;  %v160_v36 = vld [vmem:[#allocation2 + $0x3a0] sm:$0xff] }
  0x4b   :  { %652 = vmatpush1.bf16.msra.mxu0 %v651_v45  ;;  %v97_v45 = vld [vmem:[#allocation2 + $0x1a8] sm:$0xff]  ;;  %v154_v29 = vld [vmem:[#allocation2 + $0x370] sm:$0xff]  ;;  %v179_v44 = vld [vmem:[#allocation2 + $0x438] sm:$0xff] }
  0x4c   :  { %716 = vmatpush1.bf16.msra.mxu1 %v715_v46  ;;  %654 = vmatprep.subr.bf16.mxu0 %v653_v47  ;;  %v105_v46 = vld [vmem:[#allocation2 + $0x1e8] sm:$0xff]  ;;  %v99_v47 = vld [vmem:[#allocation2 + $0x1b8] sm:$0xff]  ;;  %v815_v35 = vpack.c.bf16 %v154_v29, %v146_v28  ;;  %v162_v40 = vld [vmem:[#allocation2 + $0x3b0] sm:$0xff] }
  0x4d   :  { %718 = vmatprep.subr.bf16.mxu1 %v717_v51  ;;  %v96_v51 = vld [vmem:[#allocation2 + $0x1a0] sm:$0xff]  ;;  %v737_v53 = vpack.c.bf16 %v105_v46, %v97_v45  ;;  %v801_v54 = vpack.c.bf16 %v107_v48, %v99_v47  ;;  %v169_v31 = vld [vmem:[#allocation2 + $0x3e8] sm:$0xff]  ;;  %v187_v45 = vld [vmem:[#allocation2 + $0x478] sm:$0xff] }
  0x4e   :  { %v739_v61 = vpack.c.bf16 %v104_v52, %v96_v51  ;;  %v185_v43 = vld [vmem:[#allocation2 + $0x468] sm:$0xff]  ;;  %v176_v48 = vld [vmem:[#allocation2 + $0x420] sm:$0xff]  ;;  %v821_v51 = vpack.c.bf16 %v187_v45, %v179_v44  ;;  %v178_v52 = vld [vmem:[#allocation2 + $0x430] sm:$0xff] }
  0x4f   :  { %656 = vmatpush1.bf16.msra.mxu0 %v655_v57  ;;  %v113_v57 = vld [vmem:[#allocation2 + $0x228] sm:$0xff]  ;;  %v195_v56 = vld [vmem:[#allocation2 + $0x4b8] sm:$0xff]  ;;  %v256_v45 = vld [vmem:[#allocation2 + $0x6a0] sm:$0xff] }
  0x50   :  { %720 = vmatpush1.bf16.msra.mxu1 %v719_v58  ;;  %658 = vmatprep.subr.bf16.mxu0 %v657_v59  ;;  %v121_v58 = vld [vmem:[#allocation2 + $0x268] sm:$0xff]  ;;  %v115_v59 = vld [vmem:[#allocation2 + $0x238] sm:$0xff] }
  0x51   :  { %722 = vmatprep.subr.bf16.mxu1 %v721_v63  ;;  %v112_v63 = vld [vmem:[#allocation2 + $0x220] sm:$0xff]  ;;  %v741_v1 = vpack.c.bf16 %v121_v58, %v113_v57  ;;  %v805_v2 = vpack.c.bf16 %v123_v60, %v115_v59  ;;  %v201_v55 = vld [vmem:[#allocation2 + $0x4e8] sm:$0xff]  ;;  %v203_v57 = vld [vmem:[#allocation2 + $0x4f8] sm:$0xff] }
  0x52   :  { %v192_v60 = vld [vmem:[#allocation2 + $0x4a0] sm:$0xff]  ;;  %v249_v28 = vld [vmem:[#allocation2 + $0x668] sm:$0xff]  ;;  %v243_v29 = vld [vmem:[#allocation2 + $0x638] sm:$0xff] }
  0x53   :  { %660 = vmatpush1.bf16.msra.mxu0 %v659_v5  ;;  %v129_v5 = vld [vmem:[#allocation2 + $0x2a8] sm:$0xff] }
  0x54   :  { %724 = vmatpush1.bf16.msra.mxu1 %v723_v6  ;;  %726 = vmatprep.subr.bf16.mxu0 %v725_v7  ;;  %v137_v6 = vld [vmem:[#allocation2 + $0x2e8] sm:$0xff]  ;;  %v131_v7 = vld [vmem:[#allocation2 + $0x2b8] sm:$0xff] }
  0x55   :  { %790 = vmatprep.subr.bf16.mxu1 %v789_v8  ;;  %v139_v8 = vld [vmem:[#allocation2 + $0x2f8] sm:$0xff]  ;;  %v745_v13 = vpack.c.bf16 %v137_v6, %v129_v5 }
  0x56   :  { %v809_v14 = vpack.c.bf16 %v139_v8, %v131_v7  ;;  %v219_v5 = vld [vmem:[#allocation2 + $0x578] sm:$0xff]  ;;  %v208_v8 = vld [vmem:[#allocation2 + $0x520] sm:$0xff] }
  0x93   :  { %v34_v9 = vpop.permute.xlu0 %33 }
  0x94   :  { %v36_v16 = vmul.f32 %v34_v9, %v29_v10  ;;  %v37_v17 = vmul.f32 %v34_v9, %v30_v11  ;;  %v743_v9 = vpack.c.bf16 %v120_v0, %v112_v63  ;;  %v807_v10 = vpack.c.bf16 %v122_v4, %v114_v3  ;;  %v128_v11 = vld [vmem:[#allocation2 + $0x2a0] sm:$0xff]  ;;  %v194_v0 = vld [vmem:[#allocation2 + $0x4b0] sm:$0xff]  ;;  %v217_v3 = vld [vmem:[#allocation2 + $0x568] sm:$0xff] }
  0x95   :  { %v747_v21 = vpack.c.bf16 %v136_v12, %v128_v11  ;;  %v825_v63 = vpack.c.bf16 %v203_v57, %v195_v56  ;;  %v211_v4 = vld [vmem:[#allocation2 + $0x538] sm:$0xff]  ;;  %v210_v12 = vld [vmem:[#allocation2 + $0x530] sm:$0xff]  ;;  %v272_v57 = vld [vmem:[#allocation2 + $0x720] sm:$0xff] }
  0x96   :  { %v829_v11 = vpack.c.bf16 %v219_v5, %v211_v4  ;;  %v288_v5 = vld [vmem:[#allocation2 + $0x7a0] sm:$0xff] }
  0x98   :  { %v40_v19 = vpop.permute.xlu0 %39 }
  0x99   :  { %v930_v23 = vadd.f32 %v40_v19, %v36_v16  ;;  %v43_v24 = vadd.f32 %v40_v19, %v37_v17  ;;  %v138_v16 = vld [vmem:[#allocation2 + $0x2f0] sm:$0xff]  ;;  %v145_v17 = vld [vmem:[#allocation2 + $0x328] sm:$0xff]  ;;  %v147_v19 = vld [vmem:[#allocation2 + $0x338] sm:$0xff] }
  0x9a   :  { %v811_v22 = vpack.c.bf16 %v138_v16, %v130_v15  ;;  %v813_v27 = vpack.c.bf16 %v155_v20, %v147_v19  ;;  %v233_v15 = vld [vmem:[#allocation2 + $0x5e8] sm:$0xff]  ;;  %v227_v16 = vld [vmem:[#allocation2 + $0x5b8] sm:$0xff]  ;;  %v224_v20 = vld [vmem:[#allocation2 + $0x5a0] sm:$0xff] }
  0x9b   :  { %364 = vmatprep.mubr.f32.mxu0 %v43_v24  ;;  %435 = vmatprep.mubr.f32.mxu1 %v43_v24 }
  0x9c   :  { %365 = vmatmul.mubr.f32.vlgmr.msra.gmra.mrb[0].mxu0 %v930_v23  ;;  %436 = vmatmul.mubr.f32.vlgmr.msra.gmra.mrb[0].mxu1 %v930_v23 }
  0x9d   :  { %728 = vmatpush1.bf16.msra.mxu0 %v727_v25  ;;  %792 = vmatpush1.bf16.msra.mxu1 %v791_v26  ;;  %v152_v25 = vld [vmem:[#allocation2 + $0x360] sm:$0xff]  ;;  %v749_v26 = vpack.c.bf16 %v153_v18, %v145_v17  ;;  %v235_v17 = vld [vmem:[#allocation2 + $0x5f8] sm:$0xff] }
  0x9e   :  { %506 = vmatprep.mubr.f32.mxu0 %v43_v24  ;;  %577 = vmatprep.mubr.f32.mxu1 %v43_v24  ;;  %v144_v24 = vld [vmem:[#allocation2 + $0x320] sm:$0xff] }
  0x9f   :  { %730 = vmatprep.subr.bf16.mxu0 %v729_v32  ;;  %794 = vmatprep.subr.bf16.mxu1 %v793_v33  ;;  %v163_v32 = vld [vmem:[#allocation2 + $0x3b8] sm:$0xff]  ;;  %v751_v34 = vpack.c.bf16 %v152_v25, %v144_v24  ;;  %v833_v24 = vpack.c.bf16 %v235_v17, %v227_v16  ;;  %v226_v25 = vld [vmem:[#allocation2 + $0x5b0] sm:$0xff] }
  0xa0   :  { %v171_v33 = vld [vmem:[#allocation2 + $0x3f8] sm:$0xff] }
  0xa1   :  { %732 = vmatpush1.bf16.msra.mxu0 %v731_v37  ;;  %796 = vmatpush1.bf16.msra.mxu1 %v795_v38  ;;  %v168_v37 = vld [vmem:[#allocation2 + $0x3e0] sm:$0xff]  ;;  %v753_v38 = vpack.c.bf16 %v169_v31, %v161_v30  ;;  %v817_v39 = vpack.c.bf16 %v171_v33, %v163_v32  ;;  %v251_v30 = vld [vmem:[#allocation2 + $0x678] sm:$0xff] }
  0xa2   :  { %734 = vmatprep.subr.bf16.mxu0 %v733_v41  ;;  %798 = vmatprep.subr.bf16.mxu1 %v797_v42  ;;  %v170_v41 = vld [vmem:[#allocation2 + $0x3f0] sm:$0xff]  ;;  %v177_v42 = vld [vmem:[#allocation2 + $0x428] sm:$0xff]  ;;  %v755_v46 = vpack.c.bf16 %v168_v37, %v160_v36  ;;  %v240_v33 = vld [vmem:[#allocation2 + $0x620] sm:$0xff]  ;;  %v837_v36 = vpack.c.bf16 %v251_v30, %v243_v29 }
  0xa3   :  { %v819_v47 = vpack.c.bf16 %v170_v41, %v162_v40  ;;  %v242_v37 = vld [vmem:[#allocation2 + $0x630] sm:$0xff]  ;;  %v265_v40 = vld [vmem:[#allocation2 + $0x6e8] sm:$0xff]  ;;  %v259_v41 = vld [vmem:[#allocation2 + $0x6b8] sm:$0xff] }
  0xa5   :  { %736 = vmatpush1.bf16.msra.mxu0 %v735_v49  ;;  %800 = vmatpush1.bf16.msra.mxu1 %v799_v50  ;;  %v184_v49 = vld [vmem:[#allocation2 + $0x460] sm:$0xff]  ;;  %v757_v50 = vpack.c.bf16 %v185_v43, %v177_v42  ;;  %v267_v42 = vld [vmem:[#allocation2 + $0x6f8] sm:$0xff] }
  0xa6   :  { %738 = vmatprep.subr.bf16.mxu0 %v737_v53  ;;  %802 = vmatprep.subr.bf16.mxu1 %v801_v54  ;;  %v186_v53 = vld [vmem:[#allocation2 + $0x470] sm:$0xff]  ;;  %v193_v54 = vld [vmem:[#allocation2 + $0x4a8] sm:$0xff]  ;;  %v759_v58 = vpack.c.bf16 %v184_v49, %v176_v48  ;;  %v841_v48 = vpack.c.bf16 %v267_v42, %v259_v41 }
  0xa7   :  { %v823_v59 = vpack.c.bf16 %v186_v53, %v178_v52  ;;  %v258_v49 = vld [vmem:[#allocation2 + $0x6b0] sm:$0xff]  ;;  %v281_v52 = vld [vmem:[#allocation2 + $0x768] sm:$0xff]  ;;  %v275_v53 = vld [vmem:[#allocation2 + $0x738] sm:$0xff] }
  0xa9   :  { %740 = vmatpush1.bf16.msra.mxu0 %v739_v61  ;;  %804 = vmatpush1.bf16.msra.mxu1 %v803_v62  ;;  %v200_v61 = vld [vmem:[#allocation2 + $0x4e0] sm:$0xff]  ;;  %v761_v62 = vpack.c.bf16 %v201_v55, %v193_v54  ;;  %v283_v54 = vld [vmem:[#allocation2 + $0x778] sm:$0xff] }
  0xaa   :  { %742 = vmatprep.subr.bf16.mxu0 %v741_v1  ;;  %806 = vmatprep.subr.bf16.mxu1 %v805_v2  ;;  %v202_v1 = vld [vmem:[#allocation2 + $0x4f0] sm:$0xff]  ;;  %v209_v2 = vld [vmem:[#allocation2 + $0x528] sm:$0xff]  ;;  %v763_v6 = vpack.c.bf16 %v200_v61, %v192_v60  ;;  %v845_v60 = vpack.c.bf16 %v283_v54, %v275_v53 }
  0xab   :  { %v827_v7 = vpack.c.bf16 %v202_v1, %v194_v0  ;;  %v274_v61 = vld [vmem:[#allocation2 + $0x730] sm:$0xff]  ;;  %v297_v0 = vld [vmem:[#allocation2 + $0x7e8] sm:$0xff]  ;;  %v291_v1 = vld [vmem:[#allocation2 + $0x7b8] sm:$0xff] }
  0xad   :  { %744 = vmatpush1.bf16.msra.mxu0 %v743_v9  ;;  %808 = vmatpush1.bf16.msra.mxu1 %v807_v10  ;;  %v216_v9 = vld [vmem:[#allocation2 + $0x560] sm:$0xff]  ;;  %v765_v10 = vpack.c.bf16 %v217_v3, %v209_v2  ;;  %v299_v2 = vld [vmem:[#allocation2 + $0x7f8] sm:$0xff] }
  0xae   :  { %746 = vmatprep.subr.bf16.mxu0 %v745_v13  ;;  %810 = vmatprep.subr.bf16.mxu1 %v809_v14  ;;  %v218_v13 = vld [vmem:[#allocation2 + $0x570] sm:$0xff]  ;;  %v225_v14 = vld [vmem:[#allocation2 + $0x5a8] sm:$0xff]  ;;  %v767_v18 = vpack.c.bf16 %v216_v9, %v208_v8  ;;  %v296_v8 = vld [vmem:[#allocation2 + $0x7e0] sm:$0xff] }
  0xaf   :  { %v831_v19 = vpack.c.bf16 %v218_v13, %v210_v12  ;;  %v290_v9 = vld [vmem:[#allocation2 + $0x7b0] sm:$0xff] }
  0xb1   :  { %748 = vmatpush1.bf16.msra.mxu0 %v747_v21  ;;  %812 = vmatpush1.bf16.msra.mxu1 %v811_v22  ;;  %v232_v21 = vld [vmem:[#allocation2 + $0x5e0] sm:$0xff]  ;;  %v769_v22 = vpack.c.bf16 %v233_v15, %v225_v14 }
  0xb2   :  { %750 = vmatprep.subr.bf16.mxu0 %v749_v26  ;;  %814 = vmatprep.subr.bf16.mxu1 %v813_v27  ;;  %v234_v26 = vld [vmem:[#allocation2 + $0x5f0] sm:$0xff]  ;;  %v241_v27 = vld [vmem:[#allocation2 + $0x628] sm:$0xff]  ;;  %v771_v31 = vpack.c.bf16 %v232_v21, %v224_v20 }
  0xb3   :  { %v835_v32 = vpack.c.bf16 %v234_v26, %v226_v25 }
  0xb5   :  { %752 = vmatpush1.bf16.msra.mxu0 %v751_v34  ;;  %816 = vmatpush1.bf16.msra.mxu1 %v815_v35  ;;  %v248_v34 = vld [vmem:[#allocation2 + $0x660] sm:$0xff]  ;;  %v773_v35 = vpack.c.bf16 %v249_v28, %v241_v27 }
  0xb6   :  { %754 = vmatprep.subr.bf16.mxu0 %v753_v38  ;;  %818 = vmatprep.subr.bf16.mxu1 %v817_v39  ;;  %v250_v38 = vld [vmem:[#allocation2 + $0x670] sm:$0xff]  ;;  %v257_v39 = vld [vmem:[#allocation2 + $0x6a8] sm:$0xff]  ;;  %v775_v43 = vpack.c.bf16 %v248_v34, %v240_v33 }
  0xb7   :  { %v839_v44 = vpack.c.bf16 %v250_v38, %v242_v37 }
  0xb9   :  { %756 = vmatpush1.bf16.msra.mxu0 %v755_v46  ;;  %820 = vmatpush1.bf16.msra.mxu1 %v819_v47  ;;  %v264_v46 = vld [vmem:[#allocation2 + $0x6e0] sm:$0xff]  ;;  %v777_v47 = vpack.c.bf16 %v265_v40, %v257_v39 }
  0xba   :  { %758 = vmatprep.subr.bf16.mxu0 %v757_v50  ;;  %822 = vmatprep.subr.bf16.mxu1 %v821_v51  ;;  %v266_v50 = vld [vmem:[#allocation2 + $0x6f0] sm:$0xff]  ;;  %v273_v51 = vld [vmem:[#allocation2 + $0x728] sm:$0xff]  ;;  %v779_v55 = vpack.c.bf16 %v264_v46, %v256_v45 }
  0xbb   :  { %v843_v56 = vpack.c.bf16 %v266_v50, %v258_v49 }
  0xbd   :  { %760 = vmatpush1.bf16.msra.mxu0 %v759_v58  ;;  %824 = vmatpush1.bf16.msra.mxu1 %v823_v59  ;;  %v280_v58 = vld [vmem:[#allocation2 + $0x760] sm:$0xff]  ;;  %v781_v59 = vpack.c.bf16 %v281_v52, %v273_v51 }
  0xbe   :  { %762 = vmatprep.subr.bf16.mxu0 %v761_v62  ;;  %826 = vmatprep.subr.bf16.mxu1 %v825_v63  ;;  %v282_v62 = vld [vmem:[#allocation2 + $0x770] sm:$0xff]  ;;  %v289_v63 = vld [vmem:[#allocation2 + $0x7a8] sm:$0xff]  ;;  %v783_v3 = vpack.c.bf16 %v280_v58, %v272_v57 }
  0xbf   :  { %v847_v4 = vpack.c.bf16 %v282_v62, %v274_v61 }
  0xc1   :  { %764 = vmatpush1.bf16.msra.mxu0 %v763_v6  ;;  %828 = vmatpush1.bf16.msra.mxu1 %v827_v7  ;;  %v785_v6 = vpack.c.bf16 %v297_v0, %v289_v63  ;;  %v849_v7 = vpack.c.bf16 %v299_v2, %v291_v1 }
  0xc2   :  { %766 = vmatprep.subr.bf16.mxu0 %v765_v10  ;;  %830 = vmatprep.subr.bf16.mxu1 %v829_v11  ;;  %v298_v10 = vld [vmem:[#allocation2 + $0x7f0] sm:$0xff]  ;;  %v787_v11 = vpack.c.bf16 %v296_v8, %v288_v5 }
  0xc3   :  { %v851_v12 = vpack.c.bf16 %v298_v10, %v290_v9 }
  0xc5   :  { %768 = vmatpush1.bf16.msra.mxu0 %v767_v18  ;;  %832 = vmatpush1.bf16.msra.mxu1 %v831_v19 }
  0xc6   :  { %770 = vmatprep.subr.bf16.mxu0 %v769_v22  ;;  %834 = vmatprep.subr.bf16.mxu1 %v833_v24 }
  0xc9   :  { %772 = vmatpush1.bf16.msra.mxu0 %v771_v31  ;;  %836 = vmatpush1.bf16.msra.mxu1 %v835_v32 }
  0xca   :  { %774 = vmatprep.subr.bf16.mxu0 %v773_v35  ;;  %838 = vmatprep.subr.bf16.mxu1 %v837_v36 }
  0xcd   :  { %776 = vmatpush1.bf16.msra.mxu0 %v775_v43  ;;  %840 = vmatpush1.bf16.msra.mxu1 %v839_v44 }
  0xce   :  { %778 = vmatprep.subr.bf16.mxu0 %v777_v47  ;;  %842 = vmatprep.subr.bf16.mxu1 %v841_v48 }
  0xd1   :  { %780 = vmatpush1.bf16.msra.mxu0 %v779_v55  ;;  %844 = vmatpush1.bf16.msra.mxu1 %v843_v56 }
  0xd2   :  { %782 = vmatprep.subr.bf16.mxu0 %v781_v59  ;;  %846 = vmatprep.subr.bf16.mxu1 %v845_v60 }
  0xd5   :  { %784 = vmatpush1.bf16.msra.mxu0 %v783_v3  ;;  %848 = vmatpush1.bf16.msra.mxu1 %v847_v4 }
  0xd6   :  { %786 = vmatprep.subr.bf16.mxu0 %v785_v6  ;;  %850 = vmatprep.subr.bf16.mxu1 %v849_v7 }
  0xd9   :  { %788 = vmatpush1.bf16.msra.mxu0 %v787_v11  ;;  %852 = vmatpush1.bf16.msra.mxu1 %v851_v12 }
  0xdc   :  { %507 = vmatmul.mubr.f32.vlgmr.msra.gmra.mrb[2].mxu0 %v930_v23  ;;  %578 = vmatmul.mubr.f32.vlgmr.msra.gmra.mrb[2].mxu1 %v930_v23 }
 0x16f   :  { %v366_v13 = vpop.f32.mrb[0].mxu0  ;;  %v437_v14 = vpop.f32.mrb[0].mxu1 }
 0x170   :  { %584 = vst [vmem:[%s963_s3] sm:$0x3f] %v366_v13  ;;  %586 = vst [vmem:[%s963_s3 + $0x10] sm:$0x3f] %v437_v14  ;;  %v368_v15 = vpop.f32.mrb[1].mxu0  ;;  %v439_v16 = vpop.f32.mrb[1].mxu1 }
 0x171   :  { %585 = vst [vmem:[%s963_s3 + $0x8] sm:$0x3f] %v368_v15  ;;  %587 = vst [vmem:[%s963_s3 + $0x18] sm:$0x3f] %v439_v16 }
 0x1af   :  { %v508_v23 = vpop.f32.mrb[2].mxu0  ;;  %v579_v17 = vpop.f32.mrb[2].mxu1 }
 0x1b0   :  { %588 = vst [vmem:[%s963_s3 + $0x20] sm:$0x3f] %v508_v23  ;;  %590 = vst [vmem:[%s963_s3 + $0x30] sm:$0x3f] %v579_v17  ;;  %v510_v18 = vpop.f32.mrb[3].mxu0  ;;  %v581_v19 = vpop.f32.mrb[3].mxu1 }
 0x1b1   :  { %589 = vst [vmem:[%s963_s3 + $0x28] sm:$0x3f] %v510_v18  ;;  %591 = vst [vmem:[%s963_s3 + $0x38] sm:$0x3f] %v581_v19 }
 0x1b2   :  { %596 = vsyncpa [#allocation3], 1 }

</bundles_post_ra>
